<compile_context>
chip_gen: v5e
topology: v5e:2x2
jax: 0.10.0
libtpu: 0.0.40
codegen_flags: <defaults>
</compile_context>

<pallas_src>
import functools

import jax
import jax.numpy as jnp
from jax.experimental import pallas as pl
from jax.experimental.pallas import tpu as pltpu


def td3_actor1_kernel(x_ref, w1_ref, b1_ref, w2_ref, b2_ref, o_ref):
    # x tile: [tile_b, In] fp32 in VMEM; cast to bf16 only for the MXU feed.
    x = x_ref[...].astype(jnp.bfloat16)
    # Layer 1: MXU matmul (bf16 in, fp32 accumulate) + fp32 bias + ReLU (VPU).
    h = jnp.dot(x, w1_ref[...], preferred_element_type=jnp.float32)   # [tile_b, H]
    h = jnp.maximum(h + b1_ref[...], 0.0)
    # Layer 2: MXU matmul + fp32 bias.
    y = jnp.dot(h.astype(jnp.bfloat16), w2_ref[...],
                preferred_element_type=jnp.float32)                   # [tile_b, Out]
    o_ref[...] = (y + b2_ref[...]).astype(o_ref.dtype)


@functools.partial(jax.jit, static_argnames=("block_b",))
def td3_actor1_forward(state, w1, b1, w2, b2, *, block_b=1024):
    """state: [B, In] fp32, w1: [In, H], b1: [1, H], w2: [H, Out], b2: [1, Out]."""
    B, in_dim = state.shape
    hid = w1.shape[1]
    out_dim = w2.shape[1]

    # Weights are tiny (few KiB): cast once to bf16, keep biases fp32.
    w1 = w1.astype(jnp.bfloat16)
    w2 = w2.astype(jnp.bfloat16)

    # Pick a batch tile: large to amortize per-step overhead, but no bigger
    # than the (sublane-padded) batch. tile_b is a multiple of 8 so the
    # (tile_b, In) block satisfies the second-minor tiling constraint.
    padded8 = ((B + 7) // 8) * 8
    tile_b = min(block_b, padded8)
    padded_b = ((B + tile_b - 1) // tile_b) * tile_b
    if padded_b != B:
        state = jnp.pad(state, ((0, padded_b - B), (0, 0)))
    grid = (padded_b // tile_b,)

    out = pl.pallas_call(
        td3_actor1_kernel,
        out_shape=jax.ShapeDtypeStruct((padded_b, out_dim), jnp.float32),
        grid=grid,
        in_specs=[
            # Streamed activations: one batch tile per grid step.
            pl.BlockSpec((tile_b, in_dim), lambda i: (i, 0)),
            # Weights / biases: same block every step -> resident in VMEM.
            pl.BlockSpec((in_dim, hid), lambda i: (0, 0)),
            pl.BlockSpec((1, hid), lambda i: (0, 0)),
            pl.BlockSpec((hid, out_dim), lambda i: (0, 0)),
            pl.BlockSpec((1, out_dim), lambda i: (0, 0)),
        ],
        # Full out_dim per tile -> single (masked only if out_dim<128) store.
        out_specs=pl.BlockSpec((tile_b, out_dim), lambda i: (i, 0)),
        compiler_params=pltpu.CompilerParams(
            dimension_semantics=("parallel",),  # shard batch tiles over TCs (v7x)
        ),
    )(state, w1, b1, w2, b2)

    return out[:B]


def init_params(key, input_size, hidden_size1, output_size):
    # Deterministic init mimicking PyTorch nn.Linear default:
    # U(-1/sqrt(fan_in), 1/sqrt(fan_in)) for both weight and bias.
    k1, k2, k3, k4 = jax.random.split(key, 4)
    bound1 = 1.0 / jnp.sqrt(jnp.float32(input_size))
    bound2 = 1.0 / jnp.sqrt(jnp.float32(hidden_size1))
    # Stored as [in, out] (transposed vs. PyTorch's [out, in]).
    w1 = jax.random.uniform(k1, (input_size, hidden_size1), jnp.float32,
                            -bound1, bound1)
    b1 = jax.random.uniform(k2, (1, hidden_size1), jnp.float32,
                            -bound1, bound1)
    w2 = jax.random.uniform(k3, (hidden_size1, output_size), jnp.float32,
                            -bound2, bound2)
    b2 = jax.random.uniform(k4, (1, output_size), jnp.float32,
                            -bound2, bound2)
    return w1, b1, w2, b2


if __name__ == "__main__":
    input_size, hidden_size1, output_size = 16, 32, 8
    batch = 2

    key = jax.random.PRNGKey(0)
    pkey, skey = jax.random.split(key)
    w1, b1, w2, b2 = init_params(pkey, input_size, hidden_size1, output_size)
    state = jax.random.normal(skey, (batch, input_size), jnp.float32)

    out = td3_actor1_forward(state, w1, b1, w2, b2)
    out = jax.block_until_ready(out)

    # Pure-JAX fp32 reference (same math as PyTorch forward). Kernel uses bf16
    # MXU inputs with fp32 accumulation, so tolerance is bf16-appropriate.
    ref = jnp.maximum(state @ w1 + b1, 0.0) @ w2 + b2
    assert out.shape == (batch, output_size)
    assert jnp.allclose(out, ref, atol=2e-2, rtol=2e-2), (
        f"max abs err {jnp.max(jnp.abs(out - ref))}")

    # Also exercise a larger, multi-tile batch path (grid > 1, padding).
    big_state = jax.random.normal(skey, (3000, input_size), jnp.float32)
    big_out = jax.block_until_ready(
        td3_actor1_forward(big_state, w1, b1, w2, b2))
    big_ref = jnp.maximum(big_state @ w1 + b1, 0.0) @ w2 + b2
    assert big_out.shape == (3000, output_size)
    assert jnp.allclose(big_out, big_ref, atol=2e-2, rtol=2e-2)

    print("KERNEL_OK")
</pallas_src>

<mosaic_0001>
module attributes {stable_mosaic.version = 11 : i64} {
  func.func @td3_actor1_kernel(%arg0: i32, %arg1: memref<8x16xf32, #tpu.memory_space<vmem>>, %arg2: memref<16x32xbf16, #tpu.memory_space<vmem>>, %arg3: memref<1x32xf32, #tpu.memory_space<vmem>>, %arg4: memref<32x8xbf16, #tpu.memory_space<vmem>>, %arg5: memref<1x8xf32, #tpu.memory_space<vmem>>, %arg6: memref<8x8xf32, #tpu.memory_space<vmem>>) attributes {dimension_semantics = [#tpu.dimension_semantics<parallel>], iteration_bounds = array<i64: 1>, scalar_prefetch = 0 : i64, scratch_operands = 0 : i64, tpu.core_type = #tpu.core_type<tc>, window_params = [{transform_indices = @transform_0, window_bounds = array<i64: 8, 16>}, {pipeline_mode = #tpu.pipeline_mode<synchronous>, transform_indices = @transform_1, window_bounds = array<i64: 16, 32>}, {pipeline_mode = #tpu.pipeline_mode<synchronous>, transform_indices = @transform_2, window_bounds = array<i64: 1, 32>}, {pipeline_mode = #tpu.pipeline_mode<synchronous>, transform_indices = @transform_3, window_bounds = array<i64: 32, 8>}, {pipeline_mode = #tpu.pipeline_mode<synchronous>, transform_indices = @transform_4, window_bounds = array<i64: 1, 8>}, {transform_indices = @transform_5, window_bounds = array<i64: 8, 8>}]} {
    %c0 = arith.constant 0 : index
    %c0_0 = arith.constant 0 : index
    %0 = vector.load %arg1[%c0, %c0_0] : memref<8x16xf32, #tpu.memory_space<vmem>>, vector<8x16xf32>
    %1 = arith.truncf %0 : vector<8x16xf32> to vector<8x16xbf16>
    %c0_1 = arith.constant 0 : index
    %c0_2 = arith.constant 0 : index
    %2 = vector.load %arg2[%c0_1, %c0_2] : memref<16x32xbf16, #tpu.memory_space<vmem>>, vector<16x32xbf16>
    %cst = arith.constant dense<0.000000e+00> : vector<8x32xf32>
    %3 = tpu.matmul %1, %2, %cst {dimension_numbers = #tpu.dot_dimension_numbers<[1], [0], [0], [1], [0, 0, 1, 1], [], []>} : vector<8x16xbf16>, vector<16x32xbf16>, vector<8x32xf32> -> vector<8x32xf32>
    %c0_3 = arith.constant 0 : index
    %c0_4 = arith.constant 0 : index
    %4 = vector.load %arg3[%c0_3, %c0_4] : memref<1x32xf32, #tpu.memory_space<vmem>>, vector<1x32xf32>
    %5 = vector.broadcast %4 : vector<1x32xf32> to vector<8x32xf32>
    %6 = arith.addf %3, %5 : vector<8x32xf32>
    %cst_5 = arith.constant 0.000000e+00 : f32
    %7 = vector.broadcast %cst_5 : f32 to vector<8x32xf32>
    %8 = arith.maximumf %6, %7 : vector<8x32xf32>
    %9 = arith.truncf %8 : vector<8x32xf32> to vector<8x32xbf16>
    %c0_6 = arith.constant 0 : index
    %c0_7 = arith.constant 0 : index
    %10 = vector.load %arg4[%c0_6, %c0_7] : memref<32x8xbf16, #tpu.memory_space<vmem>>, vector<32x8xbf16>
    %cst_8 = arith.constant dense<0.000000e+00> : vector<8x8xf32>
    %11 = tpu.matmul %9, %10, %cst_8 {dimension_numbers = #tpu.dot_dimension_numbers<[1], [0], [0], [1], [0, 0, 1, 1], [], []>} : vector<8x32xbf16>, vector<32x8xbf16>, vector<8x8xf32> -> vector<8x8xf32>
    %c0_9 = arith.constant 0 : index
    %c0_10 = arith.constant 0 : index
    %12 = vector.load %arg5[%c0_9, %c0_10] : memref<1x8xf32, #tpu.memory_space<vmem>>, vector<1x8xf32>
    %13 = vector.broadcast %12 : vector<1x8xf32> to vector<8x8xf32>
    %14 = arith.addf %11, %13 : vector<8x8xf32>
    %c0_11 = arith.constant 0 : index
    %c0_12 = arith.constant 0 : index
    %15 = vector.load %arg6[%c0_11, %c0_12] : memref<8x8xf32, #tpu.memory_space<vmem>>, vector<8x8xf32>
    tpu.vector_store %arg6[%c0_11, %c0_12], %14 {strides = array<i32>} : memref<8x8xf32, #tpu.memory_space<vmem>>, vector<8x8xf32>,
    return
  }
  func.func @transform_0(%arg0: i32) -> (i32, i32) {
    %c0_i32 = arith.constant 0 : i32
    %c0_i32_0 = arith.constant 0 : i32
    return %arg0, %c0_i32 : i32, i32
  }
  func.func @transform_1(%arg0: i32) -> (i32, i32) {
    %c0_i32 = arith.constant 0 : i32
    %c0_i32_0 = arith.constant 0 : i32
    %c0_i32_1 = arith.constant 0 : i32
    return %c0_i32, %c0_i32_0 : i32, i32
  }
  func.func @transform_2(%arg0: i32) -> (i32, i32) {
    %c0_i32 = arith.constant 0 : i32
    %c0_i32_0 = arith.constant 0 : i32
    %c0_i32_1 = arith.constant 0 : i32
    return %c0_i32, %c0_i32_0 : i32, i32
  }
  func.func @transform_3(%arg0: i32) -> (i32, i32) {
    %c0_i32 = arith.constant 0 : i32
    %c0_i32_0 = arith.constant 0 : i32
    %c0_i32_1 = arith.constant 0 : i32
    return %c0_i32, %c0_i32_0 : i32, i32
  }
  func.func @transform_4(%arg0: i32) -> (i32, i32) {
    %c0_i32 = arith.constant 0 : i32
    %c0_i32_0 = arith.constant 0 : i32
    %c0_i32_1 = arith.constant 0 : i32
    return %c0_i32, %c0_i32_0 : i32, i32
  }
  func.func @transform_5(%arg0: i32) -> (i32, i32) {
    %c0_i32 = arith.constant 0 : i32
    %c0_i32_0 = arith.constant 0 : i32
    return %arg0, %c0_i32 : i32, i32
  }
}

</mosaic_0001>

<bundles_post_ra>
// kernel: td3_actor1_forward.1
= control target key start
LH: loop header
LB: loop body
LE: loop exit
PB: predicated region body
PF: predicated region fallthrough
CT: control target
= control target key end

     0   :  { %vm35_vm0 = vcmask 130048   ;;  %vm74_vm1 = vcmask 261120   ;;  %vm91_vm2 = vcmask 64512   ;;  %s167_s1 = inlined_call_operand.vmem [shape: bf16[16,32], index: 1, kind: input, shape index: {}]   ;;  %s168_s0 = inlined_call_operand.vmem [shape: f32[8,16], index: 0, kind: input, shape index: {}]   ;;  %s169_s2 = inlined_call_operand.vmem [shape: f32[1,32], index: 2, kind: input, shape index: {}]   ;;  %s170_s4 = inlined_call_operand.vmem [shape: f32[1,8], index: 4, kind: input, shape index: {}]   ;;  %s171_s3 = inlined_call_operand.vmem [shape: bf16[32,8], index: 3, kind: input, shape index: {}]   ;;  %s172_s5 = inlined_call_operand.vmem [shape: f32[8,8], index: 5, kind: output, shape index: {}]  }
   0x1   :  { %v111_v0 = vld [vmem:[%s167_s1] sm:$0xff]  ;;  %v113_v3 = vld [vmem:[%s171_s3 + $0x8] sm:$0xff] }
   0x2   :  { %v21_v1 = vld [vmem:[%s168_s0] sm:$0xff]  ;;  %46 = vmatpush.bf16.msra.mxu0 %v111_v0  ;;  %84 = vmatpush.bf16.msra.mxu1 %v113_v3 }
   0x3   :  { %v22_v2 = vpack.c.bf16 %v21_v1, %v21_v1  ;;  %v112_v4 = vld [vmem:[%s171_s3] sm:$0xff] }
   0x4   :  { %v114_v5 = vld [vmem:[%s169_s2] ss:$0 sm:$0xff] }
   0x5   :  { %101 = vmatmul.msk.bf16.vlgmr.msra.gmra.mxu0 %vm35_vm0, %v22_v2  ;;  %v115_v11 = vld [vmem:[%s170_s4] ss:$0 sm:$0xff] }
   0x6   :  { %85 = vmatpush.bf16.msra.mxu1 %v112_v4 }
  0x82   :  { %v48_v6 = vpop.f32.mrf.mxu0 }
  0x83   :  { %v49_v7 = vadd.f32 %v114_v5, %v48_v6 }
  0x85   :  { %v52_v8 = vmax.f32 %v49_v7, 0.0 }
  0x87   :  { %v53_v9 = vpack.c.bf16 %v52_v8, %v52_v8 }
  0x89   :  { %110 = vmatmul.msk.bf16.vlgmr.msra.gmra.mxu1 %vm74_vm1, %v53_v9 }
  0x8a   :  { %v50_v10 = vpop.f32.mrf.mxu0 }
 0x106   :  { %v87_v12 = vpop.f32.mrf.mxu1 }
 0x107   :  { %v88_v13 = vadd.f32 %v115_v11, %v87_v12 }
 0x109   :  { %92 = vst.msk [vmem:[%s172_s5] sm:$0xff] %vm91_vm2, %v88_v13 }
 0x10e   :  { %v89_v14 = vpop.f32.mrf.mxu1 }

</bundles_post_ra>
